<compile_context>
chip_gen: v6e
topology: v6e:2x2x1
jax: 0.10.0
libtpu: 0.0.40
codegen_flags: <defaults>
</compile_context>

<pallas_src>
import functools
import math

import jax
import jax.numpy as jnp
from jax.experimental import pallas as pl
from jax.experimental.pallas import tpu as pltpu


# ----------------------------- tiling helper --------------------------------

def _pick_tile(dim: int, pref: int, align: int) -> int:
    """Largest align-multiple tile <= pref that evenly divides dim, else dim."""
    if dim <= pref:
        return dim
    t = (pref // align) * align
    while t >= align:
        if dim % t == 0:
            return t
        t -= align
    return dim


# ----------------------------- tiled matmul ----------------------------------

def _matmul_kernel(x_ref, w_ref, o_ref, acc_ref):
    @pl.when(pl.program_id(2) == 0)
    def _():
        acc_ref[...] = jnp.zeros_like(acc_ref)

    acc_ref[...] += jnp.dot(
        x_ref[...].astype(jnp.bfloat16),
        w_ref[...].astype(jnp.bfloat16),
        preferred_element_type=jnp.float32,
    )

    @pl.when(pl.program_id(2) == pl.num_programs(2) - 1)
    def _():
        o_ref[...] = acc_ref[...].astype(o_ref.dtype)


def linear2d(x2d, w_t, out_dtype=jnp.float32):
    """y = x2d @ w_t with w_t pre-transposed to (K, N) (bf16)."""
    M, K = x2d.shape
    K2, N = w_t.shape
    assert K == K2
    tm = _pick_tile(M, 256, 8)
    tn = _pick_tile(N, 256, 128)
    tk = _pick_tile(K, 512, 128)
    return pl.pallas_call(
        _matmul_kernel,
        grid=(M // tm, N // tn, K // tk),
        out_shape=jax.ShapeDtypeStruct((M, N), out_dtype),
        in_specs=[pl.BlockSpec((tm, tk), lambda i, j, k: (i, k)),
                  pl.BlockSpec((tk, tn), lambda i, j, k: (k, j))],
        out_specs=pl.BlockSpec((tm, tn), lambda i, j, k: (i, j)),
        scratch_shapes=[pltpu.VMEM((tm, tn), jnp.float32)],
        compiler_params=pltpu.CompilerParams(
            dimension_semantics=("parallel", "parallel", "arbitrary")),
    )(x2d, w_t)


# ----------------------------- RMSNorm ---------------------------------------

def _rmsnorm_kernel(x_ref, w_ref, o_ref):
    x = x_ref[...].astype(jnp.float32)
    ms = jnp.mean(x * x, axis=-1, keepdims=True)
    inv = jax.lax.rsqrt(ms + 1e-5)
    o_ref[...] = (x * inv * w_ref[...]).astype(o_ref.dtype)


def rmsnorm2d(x2d, w_row):
    M, D = x2d.shape
    tm = _pick_tile(M, 256, 8)
    return pl.pallas_call(
        _rmsnorm_kernel,
        grid=(M // tm,),
        out_shape=jax.ShapeDtypeStruct((M, D), x2d.dtype),
        in_specs=[pl.BlockSpec((tm, D), lambda i: (i, 0)),
                  pl.BlockSpec((1, D), lambda i: (0, 0))],
        out_specs=pl.BlockSpec((tm, D), lambda i: (i, 0)),
        compiler_params=pltpu.CompilerParams(
            dimension_semantics=("parallel",)),
    )(x2d, w_row)


# ----------------------------- SwiGLU (fused gate-up + tiled down) ----------

def _gate_up_kernel(x_ref, w1_ref, w3_ref, o_ref, acc1_ref, acc3_ref):
    k = pl.program_id(2)

    @pl.when(k == 0)
    def _():
        acc1_ref[...] = jnp.zeros_like(acc1_ref)
        acc3_ref[...] = jnp.zeros_like(acc3_ref)

    xb = x_ref[...].astype(jnp.bfloat16)
    acc1_ref[...] += jnp.dot(xb, w1_ref[...], preferred_element_type=jnp.float32)
    acc3_ref[...] += jnp.dot(xb, w3_ref[...], preferred_element_type=jnp.float32)

    @pl.when(k == pl.num_programs(2) - 1)
    def _():
        h1 = acc1_ref[...]
        o_ref[...] = (h1 * jax.nn.sigmoid(h1) * acc3_ref[...]).astype(o_ref.dtype)


def swiglu2d(x2d, w1_t, w2_t, w3_t):
    """SwiGLU: (silu(x@W1) * (x@W3)) @ W2 ; weights pre-transposed to (in, out)."""
    M, D = x2d.shape
    F = w1_t.shape[1]
    tm = _pick_tile(M, 256, 8)
    tf = _pick_tile(F, 256, 128)
    tk = _pick_tile(D, 512, 128)
    gate = pl.pallas_call(
        _gate_up_kernel,
        grid=(M // tm, F // tf, D // tk),
        out_shape=jax.ShapeDtypeStruct((M, F), jnp.bfloat16),
        in_specs=[pl.BlockSpec((tm, tk), lambda i, j, k: (i, k)),
                  pl.BlockSpec((tk, tf), lambda i, j, k: (k, j)),
                  pl.BlockSpec((tk, tf), lambda i, j, k: (k, j))],
        out_specs=pl.BlockSpec((tm, tf), lambda i, j, k: (i, j)),
        scratch_shapes=[pltpu.VMEM((tm, tf), jnp.float32),
                        pltpu.VMEM((tm, tf), jnp.float32)],
        compiler_params=pltpu.CompilerParams(
            dimension_semantics=("parallel", "parallel", "arbitrary")),
    )(x2d, w1_t, w3_t)
    return linear2d(gate, w2_t)


# ----------------------------- flash causal attention ------------------------

def _flash_attn_kernel(q_ref, k_ref, v_ref, o_ref, m_ref, l_ref, acc_ref,
                       *, tq, tkv, scale):
    qi = pl.program_id(1)
    ki = pl.program_id(2)

    @pl.when(ki == 0)
    def _():
        m_ref[...] = jnp.full_like(m_ref, -1e30)
        l_ref[...] = jnp.zeros_like(l_ref)
        acc_ref[...] = jnp.zeros_like(acc_ref)

    # Skip KV tiles that are entirely above the causal diagonal.
    @pl.when(ki * tkv <= qi * tq + (tq - 1))
    def _():
        q = (q_ref[0] * scale).astype(jnp.bfloat16)          # (tq, Dh)
        k = k_ref[0].astype(jnp.bfloat16)                    # (tkv, Dh)
        s = jax.lax.dot_general(
            q, k, (((1,), (1,)), ((), ())),
            preferred_element_type=jnp.float32)              # (tq, tkv)
        rows = qi * tq + jax.lax.broadcasted_iota(jnp.int32, (tq, tkv), 0)
        cols = ki * tkv + jax.lax.broadcasted_iota(jnp.int32, (tq, tkv), 1)
        s = jnp.where(cols <= rows, s, -1e30)                # finite mask (no inf-inf NaN)

        m_prev = m_ref[...]
        m_new = jnp.maximum(m_prev, jnp.max(s, axis=-1, keepdims=True))
        alpha = jnp.exp(m_prev - m_new)
        p = jnp.exp(s - m_new)
        l_ref[...] = alpha * l_ref[...] + jnp.sum(p, axis=-1, keepdims=True)
        acc_ref[...] = alpha * acc_ref[...] + jax.lax.dot_general(
            p.astype(jnp.bfloat16), v_ref[0].astype(jnp.bfloat16),
            (((1,), (0,)), ((), ())), preferred_element_type=jnp.float32)
        m_ref[...] = m_new

    @pl.when(ki == pl.num_programs(2) - 1)
    def _():
        inv_l = pl.reciprocal(l_ref[...], approx=True)
        o_ref[0] = (acc_ref[...] * inv_l).astype(o_ref.dtype)


def causal_flash_attention(q, k, v):
    # q, k, v: (B*H, S, Dh)
    BH, S, Dh = q.shape
    scale = 1.0 / math.sqrt(Dh)
    tq = _pick_tile(S, 256, 8)
    tkv = _pick_tile(S, 256, 8)
    q_spec = pl.BlockSpec((1, tq, Dh), lambda b, i, j: (b, i, 0))
    kv_spec = pl.BlockSpec((1, tkv, Dh), lambda b, i, j: (b, j, 0))
    return pl.pallas_call(
        functools.partial(_flash_attn_kernel, tq=tq, tkv=tkv, scale=scale),
        grid=(BH, S // tq, S // tkv),
        out_shape=jax.ShapeDtypeStruct((BH, S, Dh), q.dtype),
        in_specs=[q_spec, kv_spec, kv_spec],
        out_specs=pl.BlockSpec((1, tq, Dh), lambda b, i, j: (b, i, 0)),
        scratch_shapes=[pltpu.VMEM((tq, 1), jnp.float32),
                        pltpu.VMEM((tq, 1), jnp.float32),
                        pltpu.VMEM((tq, Dh), jnp.float32)],
        compiler_params=pltpu.CompilerParams(
            dimension_semantics=("parallel", "parallel", "arbitrary")),
    )(q, k, v)


# ----------------------------- RoPE (half-rotation basis) --------------------

def _rope_deinterleave_perm(d_model, num_heads):
    """Per-head permutation mapping interleaved RoPE pairs to the half layout."""
    dh = d_model // num_heads
    half = dh // 2
    idx = []
    for h in range(num_heads):
        base = h * dh
        idx.extend(base + 2 * i for i in range(half))
        idx.extend(base + 2 * i + 1 for i in range(half))
    return jnp.asarray(idx, dtype=jnp.int32)


def _rope_tables(seq_len, head_dim, theta):
    half = head_dim // 2
    freqs = 1.0 / (theta ** (jnp.arange(half, dtype=jnp.float32) * 2.0 / head_dim))
    ang = jnp.arange(seq_len, dtype=jnp.float32)[:, None] * freqs[None, :]  # (S, half)
    cos = jnp.cos(ang)
    sin = jnp.sin(ang)
    cos_t = jnp.concatenate([cos, cos], axis=-1)    # (S, Dh)
    sin_t = jnp.concatenate([-sin, sin], axis=-1)   # sign folded into table
    return cos_t, sin_t


def _apply_rope_half(x, cos_t, sin_t):
    # x: (B, H, S, Dh), already in the de-interleaved (half-rotation) basis
    # because the permutation was folded into the Q/K projection weights.
    # TODO(synk): fold this rotation into the flash kernel via pltpu.roll for large head_dim.
    half = x.shape[-1] // 2
    x_swap = jnp.concatenate([x[..., half:], x[..., :half]], axis=-1)
    return (x * cos_t + x_swap * sin_t).astype(x.dtype)


# ----------------------------- model glue ------------------------------------

def multi_head_attention(p, x, theta):
    B, S, D = x.shape
    H = p["num_heads"]
    Dh = D // H
    x2 = x.reshape(B * S, D)

    qkv = linear2d(x2, p["wqkv_t"])                         # fused QKV: (B*S, 3D)
    qkv = qkv.reshape(B, S, 3, H, Dh)
    q = jnp.transpose(qkv[:, :, 0], (0, 2, 1, 3))           # (B, H, S, Dh)
    k = jnp.transpose(qkv[:, :, 1], (0, 2, 1, 3))
    v = jnp.transpose(qkv[:, :, 2], (0, 2, 1, 3))

    cos_t, sin_t = _rope_tables(S, Dh, theta)
    q = _apply_rope_half(q, cos_t, sin_t)
    k = _apply_rope_half(k, cos_t, sin_t)

    o = causal_flash_attention(q.reshape(B * H, S, Dh),
                               k.reshape(B * H, S, Dh),
                               v.reshape(B * H, S, Dh))
    o = o.reshape(B, H, S, Dh)
    o = jnp.transpose(o, (0, 2, 1, 3)).reshape(B * S, D)
    return linear2d(o, p["wo_t"]).reshape(B, S, D)


def transformer_block(p, x, theta):
    B, S, D = x.shape
    h = rmsnorm2d(x.reshape(B * S, D), p["ln1"]).reshape(B, S, D)
    mid = x + multi_head_attention(p, h, theta)
    h2 = rmsnorm2d(mid.reshape(B * S, D), p["ln2"])
    ff = swiglu2d(h2, p["w1_t"], p["w2_t"], p["w3_t"]).reshape(B, S, D)
    return mid + ff


def transformer_lm_forward(params, in_indices):
    B, S = in_indices.shape
    x = jnp.take(params["emb"], in_indices, axis=0)         # embedding gather (XLA glue)
    for layer in params["layers"]:
        x = transformer_block(layer, x, params["theta"])
    D = x.shape[-1]
    xn = rmsnorm2d(x.reshape(B * S, D), params["ln_final"])
    logits = linear2d(xn, params["lm_head_t"])
    return logits.reshape(B, S, params["lm_head_t"].shape[1])


# ----------------------------- params ----------------------------------------

def init_raw_params(key, vocab_size, d_model, num_layers, num_heads, d_ff, rope_theta):
    """PyTorch-layout (out_features, in_features) f32 weights."""
    def nrm(k, shape, scale=0.02):
        return scale * jax.random.normal(k, shape, dtype=jnp.float32)

    keys = jax.random.split(key, 2 + num_layers)
    raw = {
        "theta": rope_theta,
        "emb": nrm(keys[0], (vocab_size, d_model)),
        "ln_final": jnp.ones((d_model,), jnp.float32),
        "lm_head": nrm(keys[1], (vocab_size, d_model)),
        "layers": [],
    }
    for i in range(num_layers):
        lk = jax.random.split(keys[2 + i], 7)
        raw["layers"].append({
            "num_heads": num_heads,
            "ln1": jnp.ones((d_model,), jnp.float32),
            "ln2": jnp.ones((d_model,), jnp.float32),
            "wq": nrm(lk[0], (d_model, d_model)),
            "wk": nrm(lk[1], (d_model, d_model)),
            "wv": nrm(lk[2], (d_model, d_model)),
            "wo": nrm(lk[3], (d_model, d_model)),
            "w1": nrm(lk[4], (d_ff, d_model)),
            "w2": nrm(lk[5], (d_model, d_ff)),
            "w3": nrm(lk[6], (d_ff, d_model)),
        })
    return raw


def prepare_params(raw):
    """Convert PyTorch-layout weights into kernel-ready (K, N) bf16 layouts,
    fuse QKV, and fold the RoPE de-interleave permutation into the Q/K weights."""
    D = raw["emb"].shape[1]
    params = {
        "theta": raw["theta"],
        "emb": raw["emb"],
        "ln_final": raw["ln_final"].reshape(1, D).astype(jnp.float32),
        "lm_head_t": jnp.transpose(raw["lm_head"]).astype(jnp.bfloat16),   # (D, V)
        "layers": [],
    }
    for lp in raw["layers"]:
        H = lp["num_heads"]
        perm = _rope_deinterleave_perm(D, H)
        wq_t = jnp.transpose(lp["wq"])[:, perm]
        wk_t = jnp.transpose(lp["wk"])[:, perm]
        wv_t = jnp.transpose(lp["wv"])
        params["layers"].append({
            "num_heads": H,
            "ln1": lp["ln1"].reshape(1, D).astype(jnp.float32),
            "ln2": lp["ln2"].reshape(1, D).astype(jnp.float32),
            "wqkv_t": jnp.concatenate([wq_t, wk_t, wv_t], axis=1).astype(jnp.bfloat16),
            "wo_t": jnp.transpose(lp["wo"]).astype(jnp.bfloat16),          # (D, D)
            "w1_t": jnp.transpose(lp["w1"]).astype(jnp.bfloat16),          # (D, F)
            "w2_t": jnp.transpose(lp["w2"]).astype(jnp.bfloat16),          # (F, D)
            "w3_t": jnp.transpose(lp["w3"]).astype(jnp.bfloat16),          # (D, F)
        })
    return params


# ----------------------------- main -------------------------------------------

if __name__ == "__main__":
    vocab_size = 64
    d_model = 32
    num_layers = 2
    num_heads = 4
    d_ff = 64
    rope_theta = 10000.0
    B, S = 2, 8

    key = jax.random.PRNGKey(0)
    pkey, ikey = jax.random.split(key)
    raw = init_raw_params(pkey, vocab_size, d_model, num_layers, num_heads, d_ff, rope_theta)
    params = prepare_params(raw)
    in_indices = jax.random.randint(ikey, (B, S), 0, vocab_size, dtype=jnp.int32)

    fwd = jax.jit(lambda idx: transformer_lm_forward(params, idx))
    logits = jax.block_until_ready(fwd(in_indices))

    assert logits.shape == (B, S, vocab_size)
    assert bool(jnp.all(jnp.isfinite(logits)))
    print("KERNEL_OK")
</pallas_src>

<mosaic_0001>
module attributes {stable_mosaic.version = 11 : i64} {
  func.func @_rmsnorm_kernel(%arg0: i32, %arg1: memref<16x32xf32, #tpu.memory_space<vmem>>, %arg2: memref<1x32xf32, #tpu.memory_space<vmem>>, %arg3: memref<16x32xf32, #tpu.memory_space<vmem>>) attributes {dimension_semantics = [#tpu.dimension_semantics<parallel>], iteration_bounds = array<i64: 1>, scalar_prefetch = 0 : i64, scratch_operands = 0 : i64, tpu.core_type = #tpu.core_type<tc>, window_params = [{transform_indices = @transform_0, window_bounds = array<i64: 16, 32>}, {pipeline_mode = #tpu.pipeline_mode<synchronous>, transform_indices = @transform_1, window_bounds = array<i64: 1, 32>}, {transform_indices = @transform_2, window_bounds = array<i64: 16, 32>}]} {
    %c0 = arith.constant 0 : index
    %c0_0 = arith.constant 0 : index
    %0 = vector.load %arg1[%c0, %c0_0] : memref<16x32xf32, #tpu.memory_space<vmem>>, vector<16x32xf32>
    %1 = arith.mulf %0, %0 : vector<16x32xf32>
    %cst = arith.constant dense<0.000000e+00> : vector<16xf32>
    %2 = vector.multi_reduction <add>, %1, %cst [1] : vector<16x32xf32> to vector<16xf32>
    %3 = vector.shape_cast %2 : vector<16xf32> to vector<16x1xf32>
    %cst_1 = arith.constant 3.200000e+01 : f32
    %4 = vector.broadcast %cst_1 : f32 to vector<16x1xf32>
    %5 = arith.divf %3, %4 : vector<16x1xf32>
    %cst_2 = arith.constant 9.99999974E-6 : f32
    %6 = vector.broadcast %cst_2 : f32 to vector<16x1xf32>
    %7 = arith.addf %5, %6 : vector<16x1xf32>
    %8 = math.rsqrt %7 : vector<16x1xf32>
    %9 = vector.broadcast %8 : vector<16x1xf32> to vector<16x32xf32>
    %10 = arith.mulf %0, %9 : vector<16x32xf32>
    %c0_3 = arith.constant 0 : index
    %c0_4 = arith.constant 0 : index
    %11 = vector.load %arg2[%c0_3, %c0_4] : memref<1x32xf32, #tpu.memory_space<vmem>>, vector<1x32xf32>
    %12 = vector.broadcast %11 : vector<1x32xf32> to vector<16x32xf32>
    %13 = arith.mulf %10, %12 : vector<16x32xf32>
    %c0_5 = arith.constant 0 : index
    %c0_6 = arith.constant 0 : index
    %14 = vector.load %arg3[%c0_5, %c0_6] : memref<16x32xf32, #tpu.memory_space<vmem>>, vector<16x32xf32>
    tpu.vector_store %arg3[%c0_5, %c0_6], %13 {strides = array<i32>} : memref<16x32xf32, #tpu.memory_space<vmem>>, vector<16x32xf32>,
    return
  }
  func.func @transform_0(%arg0: i32) -> (i32, i32) {
    %c0_i32 = arith.constant 0 : i32
    %c0_i32_0 = arith.constant 0 : i32
    return %arg0, %c0_i32 : i32, i32
  }
  func.func @transform_1(%arg0: i32) -> (i32, i32) {
    %c0_i32 = arith.constant 0 : i32
    %c0_i32_0 = arith.constant 0 : i32
    %c0_i32_1 = arith.constant 0 : i32
    return %c0_i32, %c0_i32_0 : i32, i32
  }
  func.func @transform_2(%arg0: i32) -> (i32, i32) {
    %c0_i32 = arith.constant 0 : i32
    %c0_i32_0 = arith.constant 0 : i32
    return %arg0, %c0_i32 : i32, i32
  }
}

module attributes {stable_mosaic.version = 11 : i64} {
  func.func @_matmul_kernel(%arg0: i32, %arg1: i32, %arg2: i32, %arg3: memref<16x32xf32, #tpu.memory_space<vmem>>, %arg4: memref<32x96xbf16, #tpu.memory_space<vmem>>, %arg5: memref<16x96xf32, #tpu.memory_space<vmem>>, %arg6: memref<16x96xf32, #tpu.memory_space<vmem>>) attributes {dimension_semantics = [#tpu.dimension_semantics<parallel>, #tpu.dimension_semantics<parallel>, #tpu.dimension_semantics<arbitrary>], iteration_bounds = array<i64: 1, 1, 1>, scalar_prefetch = 0 : i64, scratch_operands = 1 : i64, tpu.core_type = #tpu.core_type<tc>, window_params = [{transform_indices = @transform_0, window_bounds = array<i64: 16, 32>}, {transform_indices = @transform_1, window_bounds = array<i64: 32, 96>}, {transform_indices = @transform_2, window_bounds = array<i64: 16, 96>}]} {
    %c0_i32 = arith.constant 0 : i32
    %0 = arith.cmpi eq, %arg2, %c0_i32 : i32
    %1 = arith.extui %0 : i1 to i32
    %c0_i32_0 = arith.constant 0 : i32
    %2 = arith.cmpi ne, %1, %c0_i32_0 : i32
    scf.if %2 {
      %cst_10 = arith.constant 0.000000e+00 : f32
      %13 = vector.broadcast %cst_10 : f32 to vector<16x96xf32>
      %c0_11 = arith.constant 0 : index
      %c0_12 = arith.constant 0 : index
      %14 = vector.load %arg6[%c0_11, %c0_12] : memref<16x96xf32, #tpu.memory_space<vmem>>, vector<16x96xf32>
      tpu.vector_store %arg6[%c0_11, %c0_12], %13 {strides = array<i32>} : memref<16x96xf32, #tpu.memory_space<vmem>>, vector<16x96xf32>,
    } else {
    }
    %c0 = arith.constant 0 : index
    %c0_1 = arith.constant 0 : index
    %3 = vector.load %arg6[%c0, %c0_1] : memref<16x96xf32, #tpu.memory_space<vmem>>, vector<16x96xf32>
    %c0_2 = arith.constant 0 : index
    %c0_3 = arith.constant 0 : index
    %4 = vector.load %arg3[%c0_2, %c0_3] : memref<16x32xf32, #tpu.memory_space<vmem>>, vector<16x32xf32>
    %5 = arith.truncf %4 : vector<16x32xf32> to vector<16x32xbf16>
    %c0_4 = arith.constant 0 : index
    %c0_5 = arith.constant 0 : index
    %6 = vector.load %arg4[%c0_4, %c0_5] : memref<32x96xbf16, #tpu.memory_space<vmem>>, vector<32x96xbf16>
    %cst = arith.constant dense<0.000000e+00> : vector<16x96xf32>
    %7 = tpu.matmul %5, %6, %cst {dimension_numbers = #tpu.dot_dimension_numbers<[1], [0], [0], [1], [0, 0, 1, 1], [], []>} : vector<16x32xbf16>, vector<32x96xbf16>, vector<16x96xf32> -> vector<16x96xf32>
    %8 = arith.addf %3, %7 : vector<16x96xf32>
    %c0_6 = arith.constant 0 : index
    %c0_7 = arith.constant 0 : index
    %9 = vector.load %arg6[%c0_6, %c0_7] : memref<16x96xf32, #tpu.memory_space<vmem>>, vector<16x96xf32>
    tpu.vector_store %arg6[%c0_6, %c0_7], %8 {strides = array<i32>} : memref<16x96xf32, #tpu.memory_space<vmem>>, vector<16x96xf32>,
    %c0_i32_8 = arith.constant 0 : i32
    %10 = arith.cmpi eq, %arg2, %c0_i32_8 : i32
    %11 = arith.extui %10 : i1 to i32
    %c0_i32_9 = arith.constant 0 : i32
    %12 = arith.cmpi ne, %11, %c0_i32_9 : i32
    scf.if %12 {
      %c0_10 = arith.constant 0 : index
      %c0_11 = arith.constant 0 : index
      %13 = vector.load %arg6[%c0_10, %c0_11] : memref<16x96xf32, #tpu.memory_space<vmem>>, vector<16x96xf32>
      %c0_12 = arith.constant 0 : index
      %c0_13 = arith.constant 0 : index
      %14 = vector.load %arg5[%c0_12, %c0_13] : memref<16x96xf32, #tpu.memory_space<vmem>>, vector<16x96xf32>
      tpu.vector_store %arg5[%c0_12, %c0_13], %13 {strides = array<i32>} : memref<16x96xf32, #tpu.memory_space<vmem>>, vector<16x96xf32>,
    } else {
    }
    return
  }
  func.func @transform_0(%arg0: i32, %arg1: i32, %arg2: i32) -> (i32, i32) {
    %c0_i32 = arith.constant 0 : i32
    return %arg0, %arg2 : i32, i32
  }
  func.func @transform_1(%arg0: i32, %arg1: i32, %arg2: i32) -> (i32, i32) {
    %c0_i32 = arith.constant 0 : i32
    return %arg2, %arg1 : i32, i32
  }
  func.func @transform_2(%arg0: i32, %arg1: i32, %arg2: i32) -> (i32, i32) {
    %c0_i32 = arith.constant 0 : i32
    return %arg0, %arg1 : i32, i32
  }
}

module attributes {stable_mosaic.version = 11 : i64} {
  func.func @_flash_attn_kernel(%arg0: i32, %arg1: i32, %arg2: i32, %arg3: memref<1x8x8xf32, #tpu.memory_space<vmem>>, %arg4: memref<1x8x8xf32, #tpu.memory_space<vmem>>, %arg5: memref<1x8x8xf32, #tpu.memory_space<vmem>>, %arg6: memref<1x8x8xf32, #tpu.memory_space<vmem>>, %arg7: memref<8x1xf32, #tpu.memory_space<vmem>>, %arg8: memref<8x1xf32, #tpu.memory_space<vmem>>, %arg9: memref<8x8xf32, #tpu.memory_space<vmem>>) attributes {dimension_semantics = [#tpu.dimension_semantics<parallel>, #tpu.dimension_semantics<parallel>, #tpu.dimension_semantics<arbitrary>], iteration_bounds = array<i64: 8, 1, 1>, scalar_prefetch = 0 : i64, scratch_operands = 3 : i64, tpu.core_type = #tpu.core_type<tc>, window_params = [{transform_indices = @transform_0, window_bounds = array<i64: 1, 8, 8>}, {transform_indices = @transform_1, window_bounds = array<i64: 1, 8, 8>}, {transform_indices = @transform_2, window_bounds = array<i64: 1, 8, 8>}, {transform_indices = @transform_3, window_bounds = array<i64: 1, 8, 8>}]} {
    %c0_i32 = arith.constant 0 : i32
    %0 = arith.cmpi eq, %arg2, %c0_i32 : i32
    %1 = arith.extui %0 : i1 to i32
    %c0_i32_0 = arith.constant 0 : i32
    %2 = arith.cmpi ne, %1, %c0_i32_0 : i32
    scf.if %2 {
      %cst = arith.constant -1.000000e+30 : f32
      %12 = vector.broadcast %cst : f32 to vector<8x1xf32>
      %c0 = arith.constant 0 : index
      %c0_5 = arith.constant 0 : index
      %13 = vector.load %arg7[%c0, %c0_5] : memref<8x1xf32, #tpu.memory_space<vmem>>, vector<8x1xf32>
      tpu.vector_store %arg7[%c0, %c0_5], %12 {strides = array<i32>} : memref<8x1xf32, #tpu.memory_space<vmem>>, vector<8x1xf32>,
      %cst_6 = arith.constant 0.000000e+00 : f32
      %14 = vector.broadcast %cst_6 : f32 to vector<8x1xf32>
      %c0_7 = arith.constant 0 : index
      %c0_8 = arith.constant 0 : index
      %15 = vector.load %arg8[%c0_7, %c0_8] : memref<8x1xf32, #tpu.memory_space<vmem>>, vector<8x1xf32>
      tpu.vector_store %arg8[%c0_7, %c0_8], %14 {strides = array<i32>} : memref<8x1xf32, #tpu.memory_space<vmem>>, vector<8x1xf32>,
      %cst_9 = arith.constant 0.000000e+00 : f32
      %16 = vector.broadcast %cst_9 : f32 to vector<8x8xf32>
      %c0_10 = arith.constant 0 : index
      %c0_11 = arith.constant 0 : index
      %17 = vector.load %arg9[%c0_10, %c0_11] : memref<8x8xf32, #tpu.memory_space<vmem>>, vector<8x8xf32>
      tpu.vector_store %arg9[%c0_10, %c0_11], %16 {strides = array<i32>} : memref<8x8xf32, #tpu.memory_space<vmem>>, vector<8x8xf32>,
    } else {
    }
    %c8_i32 = arith.constant 8 : i32
    %3 = arith.muli %arg2, %c8_i32 : i32
    %c8_i32_1 = arith.constant 8 : i32
    %4 = arith.muli %arg1, %c8_i32_1 : i32
    %c7_i32 = arith.constant 7 : i32
    %5 = arith.addi %4, %c7_i32 : i32
    %6 = arith.cmpi sle, %3, %5 : i32
    %7 = arith.extui %6 : i1 to i32
    %c0_i32_2 = arith.constant 0 : i32
    %8 = arith.cmpi ne, %7, %c0_i32_2 : i32
    scf.if %8 {
      %c0 = arith.constant 0 : index
      %c0_5 = arith.constant 0 : index
      %c0_6 = arith.constant 0 : index
      %12 = vector.load %arg3[%c0, %c0_5, %c0_6] : memref<1x8x8xf32, #tpu.memory_space<vmem>>, vector<1x8x8xf32>
      %13 = vector.shape_cast %12 : vector<1x8x8xf32> to vector<8x8xf32>
      %cst = arith.constant 0.353553385 : f32
      %14 = vector.broadcast %cst : f32 to vector<8x8xf32>
      %15 = arith.mulf %13, %14 : vector<8x8xf32>
      %16 = arith.truncf %15 : vector<8x8xf32> to vector<8x8xbf16>
      %c0_7 = arith.constant 0 : index
      %c0_8 = arith.constant 0 : index
      %c0_9 = arith.constant 0 : index
      %17 = vector.load %arg4[%c0_7, %c0_8, %c0_9] : memref<1x8x8xf32, #tpu.memory_space<vmem>>, vector<1x8x8xf32>
      %18 = vector.shape_cast %17 : vector<1x8x8xf32> to vector<8x8xf32>
      %19 = arith.truncf %18 : vector<8x8xf32> to vector<8x8xbf16>
      %cst_10 = arith.constant dense<0.000000e+00> : vector<8x8xf32>
      %20 = tpu.matmul %16, %19, %cst_10 {dimension_numbers = #tpu.dot_dimension_numbers<[1], [1], [0], [0], [0, 0, 1, 0], [], []>} : vector<8x8xbf16>, vector<8x8xbf16>, vector<8x8xf32> -> vector<8x8xf32>
      %c8_i32_11 = arith.constant 8 : i32
      %21 = arith.muli %arg1, %c8_i32_11 : i32
      %22 = tpu.iota {dimensions = array<i32: 0>} : vector<8x8xi32>
      %23 = vector.broadcast %21 : i32 to vector<8x8xi32>
      %24 = arith.addi %23, %22 : vector<8x8xi32>
      %c8_i32_12 = arith.constant 8 : i32
      %25 = arith.muli %arg2, %c8_i32_12 : i32
      %26 = tpu.iota {dimensions = array<i32: 1>} : vector<8x8xi32>
      %27 = vector.broadcast %25 : i32 to vector<8x8xi32>
      %28 = arith.addi %27, %26 : vector<8x8xi32>
      %29 = arith.cmpi sle, %28, %24 : vector<8x8xi32>
      %cst_13 = arith.constant -1.000000e+30 : f32
      %30 = vector.broadcast %cst_13 : f32 to vector<8x8xf32>
      %31 = arith.select %29, %20, %30 : vector<8x8xi1>, vector<8x8xf32>
      %c0_14 = arith.constant 0 : index
      %c0_15 = arith.constant 0 : index
      %32 = vector.load %arg7[%c0_14, %c0_15] : memref<8x1xf32, #tpu.memory_space<vmem>>, vector<8x1xf32>
      %cst_16 = arith.constant dense<0xFF800000> : vector<8xf32>
      %33 = vector.multi_reduction <maximumf>, %31, %cst_16 [1] : vector<8x8xf32> to vector<8xf32>
      %34 = vector.shape_cast %33 : vector<8xf32> to vector<8x1xf32>
      %35 = arith.maximumf %32, %34 : vector<8x1xf32>
      %36 = arith.subf %32, %35 : vector<8x1xf32>
      %37 = math.exp %36 : vector<8x1xf32>
      %38 = vector.broadcast %35 : vector<8x1xf32> to vector<8x8xf32>
      %39 = arith.subf %31, %38 : vector<8x8xf32>
      %40 = math.exp %39 : vector<8x8xf32>
      %c0_17 = arith.constant 0 : index
      %c0_18 = arith.constant 0 : index
      %41 = vector.load %arg8[%c0_17, %c0_18] : memref<8x1xf32, #tpu.memory_space<vmem>>, vector<8x1xf32>
      %42 = arith.mulf %37, %41 : vector<8x1xf32>
      %cst_19 = arith.constant dense<0.000000e+00> : vector<8xf32>
      %43 = vector.multi_reduction <add>, %40, %cst_19 [1] : vector<8x8xf32> to vector<8xf32>
      %44 = vector.shape_cast %43 : vector<8xf32> to vector<8x1xf32>
      %45 = arith.addf %42, %44 : vector<8x1xf32>
      %c0_20 = arith.constant 0 : index
      %c0_21 = arith.constant 0 : index
      %46 = vector.load %arg8[%c0_20, %c0_21] : memref<8x1xf32, #tpu.memory_space<vmem>>, vector<8x1xf32>
      tpu.vector_store %arg8[%c0_20, %c0_21], %45 {strides = array<i32>} : memref<8x1xf32, #tpu.memory_space<vmem>>, vector<8x1xf32>,
      %c0_22 = arith.constant 0 : index
      %c0_23 = arith.constant 0 : index
      %47 = vector.load %arg9[%c0_22, %c0_23] : memref<8x8xf32, #tpu.memory_space<vmem>>, vector<8x8xf32>
      %48 = vector.broadcast %37 : vector<8x1xf32> to vector<8x8xf32>
      %49 = arith.mulf %48, %47 : vector<8x8xf32>
      %50 = arith.truncf %40 : vector<8x8xf32> to vector<8x8xbf16>
      %c0_24 = arith.constant 0 : index
      %c0_25 = arith.constant 0 : index
      %c0_26 = arith.constant 0 : index
      %51 = vector.load %arg5[%c0_24, %c0_25, %c0_26] : memref<1x8x8xf32, #tpu.memory_space<vmem>>, vector<1x8x8xf32>
      %52 = vector.shape_cast %51 : vector<1x8x8xf32> to vector<8x8xf32>
      %53 = arith.truncf %52 : vector<8x8xf32> to vector<8x8xbf16>
      %cst_27 = arith.constant dense<0.000000e+00> : vector<8x8xf32>
      %54 = tpu.matmul %50, %53, %cst_27 {dimension_numbers = #tpu.dot_dimension_numbers<[1], [0], [0], [1], [0, 0, 1, 1], [], []>} : vector<8x8xbf16>, vector<8x8xbf16>, vector<8x8xf32> -> vector<8x8xf32>
      %55 = arith.addf %49, %54 : vector<8x8xf32>
      %c0_28 = arith.constant 0 : index
      %c0_29 = arith.constant 0 : index
      %56 = vector.load %arg9[%c0_28, %c0_29] : memref<8x8xf32, #tpu.memory_space<vmem>>, vector<8x8xf32>
      tpu.vector_store %arg9[%c0_28, %c0_29], %55 {strides = array<i32>} : memref<8x8xf32, #tpu.memory_space<vmem>>, vector<8x8xf32>,
      %c0_30 = arith.constant 0 : index
      %c0_31 = arith.constant 0 : index
      %57 = vector.load %arg7[%c0_30, %c0_31] : memref<8x1xf32, #tpu.memory_space<vmem>>, vector<8x1xf32>
      tpu.vector_store %arg7[%c0_30, %c0_31], %35 {strides = array<i32>} : memref<8x1xf32, #tpu.memory_space<vmem>>, vector<8x1xf32>,
    } else {
    }
    %c0_i32_3 = arith.constant 0 : i32
    %9 = arith.cmpi eq, %arg2, %c0_i32_3 : i32
    %10 = arith.extui %9 : i1 to i32
    %c0_i32_4 = arith.constant 0 : i32
    %11 = arith.cmpi ne, %10, %c0_i32_4 : i32
    scf.if %11 {
      %c0 = arith.constant 0 : index
      %c0_5 = arith.constant 0 : index
      %12 = vector.load %arg8[%c0, %c0_5] : memref<8x1xf32, #tpu.memory_space<vmem>>, vector<8x1xf32>
      %13 = tpu.reciprocal %12 {approx = true} : vector<8x1xf32> -> vector<8x1xf32>
      %c0_6 = arith.constant 0 : index
      %c0_7 = arith.constant 0 : index
      %14 = vector.load %arg9[%c0_6, %c0_7] : memref<8x8xf32, #tpu.memory_space<vmem>>, vector<8x8xf32>
      %15 = vector.broadcast %13 : vector<8x1xf32> to vector<8x8xf32>
      %16 = arith.mulf %14, %15 : vector<8x8xf32>
      %c0_8 = arith.constant 0 : index
      %c0_9 = arith.constant 0 : index
      %c0_10 = arith.constant 0 : index
      %17 = vector.load %arg6[%c0_8, %c0_9, %c0_10] : memref<1x8x8xf32, #tpu.memory_space<vmem>>, vector<1x8x8xf32>
      %18 = vector.shape_cast %17 : vector<1x8x8xf32> to vector<8x8xf32>
      %19 = vector.shape_cast %16 : vector<8x8xf32> to vector<1x8x8xf32>
      tpu.vector_store %arg6[%c0_8, %c0_9, %c0_10], %19 {strides = array<i32>} : memref<1x8x8xf32, #tpu.memory_space<vmem>>, vector<1x8x8xf32>,
    } else {
    }
    return
  }
  func.func @transform_0(%arg0: i32, %arg1: i32, %arg2: i32) -> (i32, i32, i32) {
    %c0_i32 = arith.constant 0 : i32
    %c0_i32_0 = arith.constant 0 : i32
    return %arg0, %arg1, %c0_i32 : i32, i32, i32
  }
  func.func @transform_1(%arg0: i32, %arg1: i32, %arg2: i32) -> (i32, i32, i32) {
    %c0_i32 = arith.constant 0 : i32
    %c0_i32_0 = arith.constant 0 : i32
    return %arg0, %arg2, %c0_i32 : i32, i32, i32
  }
  func.func @transform_2(%arg0: i32, %arg1: i32, %arg2: i32) -> (i32, i32, i32) {
    %c0_i32 = arith.constant 0 : i32
    %c0_i32_0 = arith.constant 0 : i32
    return %arg0, %arg2, %c0_i32 : i32, i32, i32
  }
  func.func @transform_3(%arg0: i32, %arg1: i32, %arg2: i32) -> (i32, i32, i32) {
    %c0_i32 = arith.constant 0 : i32
    %c0_i32_0 = arith.constant 0 : i32
    return %arg0, %arg1, %c0_i32 : i32, i32, i32
  }
}

module attributes {stable_mosaic.version = 11 : i64} {
  func.func @_gate_up_kernel(%arg0: i32, %arg1: i32, %arg2: i32, %arg3: memref<16x32xf32, #tpu.memory_space<vmem>>, %arg4: memref<32x64xbf16, #tpu.memory_space<vmem>>, %arg5: memref<32x64xbf16, #tpu.memory_space<vmem>>, %arg6: memref<16x64xbf16, #tpu.memory_space<vmem>>, %arg7: memref<16x64xf32, #tpu.memory_space<vmem>>, %arg8: memref<16x64xf32, #tpu.memory_space<vmem>>) attributes {dimension_semantics = [#tpu.dimension_semantics<parallel>, #tpu.dimension_semantics<parallel>, #tpu.dimension_semantics<arbitrary>], iteration_bounds = array<i64: 1, 1, 1>, scalar_prefetch = 0 : i64, scratch_operands = 2 : i64, tpu.core_type = #tpu.core_type<tc>, window_params = [{transform_indices = @transform_0, window_bounds = array<i64: 16, 32>}, {transform_indices = @transform_1, window_bounds = array<i64: 32, 64>}, {transform_indices = @transform_2, window_bounds = array<i64: 32, 64>}, {transform_indices = @transform_3, window_bounds = array<i64: 16, 64>}]} {
    %c0_i32 = arith.constant 0 : i32
    %0 = arith.cmpi eq, %arg2, %c0_i32 : i32
    %1 = arith.extui %0 : i1 to i32
    %c0_i32_0 = arith.constant 0 : i32
    %2 = arith.cmpi ne, %1, %c0_i32_0 : i32
    scf.if %2 {
      %cst_17 = arith.constant 0.000000e+00 : f32
      %18 = vector.broadcast %cst_17 : f32 to vector<16x64xf32>
      %c0_18 = arith.constant 0 : index
      %c0_19 = arith.constant 0 : index
      %19 = vector.load %arg7[%c0_18, %c0_19] : memref<16x64xf32, #tpu.memory_space<vmem>>, vector<16x64xf32>
      tpu.vector_store %arg7[%c0_18, %c0_19], %18 {strides = array<i32>} : memref<16x64xf32, #tpu.memory_space<vmem>>, vector<16x64xf32>,
      %cst_20 = arith.constant 0.000000e+00 : f32
      %20 = vector.broadcast %cst_20 : f32 to vector<16x64xf32>
      %c0_21 = arith.constant 0 : index
      %c0_22 = arith.constant 0 : index
      %21 = vector.load %arg8[%c0_21, %c0_22] : memref<16x64xf32, #tpu.memory_space<vmem>>, vector<16x64xf32>
      tpu.vector_store %arg8[%c0_21, %c0_22], %20 {strides = array<i32>} : memref<16x64xf32, #tpu.memory_space<vmem>>, vector<16x64xf32>,
    } else {
    }
    %c0 = arith.constant 0 : index
    %c0_1 = arith.constant 0 : index
    %3 = vector.load %arg3[%c0, %c0_1] : memref<16x32xf32, #tpu.memory_space<vmem>>, vector<16x32xf32>
    %4 = arith.truncf %3 : vector<16x32xf32> to vector<16x32xbf16>
    %c0_2 = arith.constant 0 : index
    %c0_3 = arith.constant 0 : index
    %5 = vector.load %arg7[%c0_2, %c0_3] : memref<16x64xf32, #tpu.memory_space<vmem>>, vector<16x64xf32>
    %c0_4 = arith.constant 0 : index
    %c0_5 = arith.constant 0 : index
    %6 = vector.load %arg4[%c0_4, %c0_5] : memref<32x64xbf16, #tpu.memory_space<vmem>>, vector<32x64xbf16>
    %cst = arith.constant dense<0.000000e+00> : vector<16x64xf32>
    %7 = tpu.matmul %4, %6, %cst {dimension_numbers = #tpu.dot_dimension_numbers<[1], [0], [0], [1], [0, 0, 1, 1], [], []>} : vector<16x32xbf16>, vector<32x64xbf16>, vector<16x64xf32> -> vector<16x64xf32>
    %8 = arith.addf %5, %7 : vector<16x64xf32>
    %c0_6 = arith.constant 0 : index
    %c0_7 = arith.constant 0 : index
    %9 = vector.load %arg7[%c0_6, %c0_7] : memref<16x64xf32, #tpu.memory_space<vmem>>, vector<16x64xf32>
    tpu.vector_store %arg7[%c0_6, %c0_7], %8 {strides = array<i32>} : memref<16x64xf32, #tpu.memory_space<vmem>>, vector<16x64xf32>,
    %c0_8 = arith.constant 0 : index
    %c0_9 = arith.constant 0 : index
    %10 = vector.load %arg8[%c0_8, %c0_9] : memref<16x64xf32, #tpu.memory_space<vmem>>, vector<16x64xf32>
    %c0_10 = arith.constant 0 : index
    %c0_11 = arith.constant 0 : index
    %11 = vector.load %arg5[%c0_10, %c0_11] : memref<32x64xbf16, #tpu.memory_space<vmem>>, vector<32x64xbf16>
    %cst_12 = arith.constant dense<0.000000e+00> : vector<16x64xf32>
    %12 = tpu.matmul %4, %11, %cst_12 {dimension_numbers = #tpu.dot_dimension_numbers<[1], [0], [0], [1], [0, 0, 1, 1], [], []>} : vector<16x32xbf16>, vector<32x64xbf16>, vector<16x64xf32> -> vector<16x64xf32>
    %13 = arith.addf %10, %12 : vector<16x64xf32>
    %c0_13 = arith.constant 0 : index
    %c0_14 = arith.constant 0 : index
    %14 = vector.load %arg8[%c0_13, %c0_14] : memref<16x64xf32, #tpu.memory_space<vmem>>, vector<16x64xf32>
    tpu.vector_store %arg8[%c0_13, %c0_14], %13 {strides = array<i32>} : memref<16x64xf32, #tpu.memory_space<vmem>>, vector<16x64xf32>,
    %c0_i32_15 = arith.constant 0 : i32
    %15 = arith.cmpi eq, %arg2, %c0_i32_15 : i32
    %16 = arith.extui %15 : i1 to i32
    %c0_i32_16 = arith.constant 0 : i32
    %17 = arith.cmpi ne, %16, %c0_i32_16 : i32
    scf.if %17 {
      %c0_17 = arith.constant 0 : index
      %c0_18 = arith.constant 0 : index
      %18 = vector.load %arg7[%c0_17, %c0_18] : memref<16x64xf32, #tpu.memory_space<vmem>>, vector<16x64xf32>
      %19 = arith.negf %18 : vector<16x64xf32>
      %20 = math.exp %19 : vector<16x64xf32>
      %cst_19 = arith.constant 1.000000e+00 : f32
      %21 = vector.broadcast %cst_19 : f32 to vector<16x64xf32>
      %22 = arith.addf %21, %20 : vector<16x64xf32>
      %23 = arith.divf %21, %22 : vector<16x64xf32>
      %24 = arith.mulf %18, %23 : vector<16x64xf32>
      %c0_20 = arith.constant 0 : index
      %c0_21 = arith.constant 0 : index
      %25 = vector.load %arg8[%c0_20, %c0_21] : memref<16x64xf32, #tpu.memory_space<vmem>>, vector<16x64xf32>
      %26 = arith.mulf %24, %25 : vector<16x64xf32>
      %27 = arith.truncf %26 : vector<16x64xf32> to vector<16x64xbf16>
      %c0_22 = arith.constant 0 : index
      %c0_23 = arith.constant 0 : index
      %28 = vector.load %arg6[%c0_22, %c0_23] : memref<16x64xbf16, #tpu.memory_space<vmem>>, vector<16x64xbf16>
      tpu.vector_store %arg6[%c0_22, %c0_23], %27 {strides = array<i32>} : memref<16x64xbf16, #tpu.memory_space<vmem>>, vector<16x64xbf16>,
    } else {
    }
    return
  }
  func.func @transform_0(%arg0: i32, %arg1: i32, %arg2: i32) -> (i32, i32) {
    %c0_i32 = arith.constant 0 : i32
    return %arg0, %arg2 : i32, i32
  }
  func.func @transform_1(%arg0: i32, %arg1: i32, %arg2: i32) -> (i32, i32) {
    %c0_i32 = arith.constant 0 : i32
    return %arg2, %arg1 : i32, i32
  }
  func.func @transform_2(%arg0: i32, %arg1: i32, %arg2: i32) -> (i32, i32) {
    %c0_i32 = arith.constant 0 : i32
    return %arg2, %arg1 : i32, i32
  }
  func.func @transform_3(%arg0: i32, %arg1: i32, %arg2: i32) -> (i32, i32) {
    %c0_i32 = arith.constant 0 : i32
    return %arg0, %arg1 : i32, i32
  }
}

module attributes {stable_mosaic.version = 11 : i64} {
  func.func @_matmul_kernel(%arg0: i32, %arg1: i32, %arg2: i32, %arg3: memref<16x32xf32, #tpu.memory_space<vmem>>, %arg4: memref<32x32xbf16, #tpu.memory_space<vmem>>, %arg5: memref<16x32xf32, #tpu.memory_space<vmem>>, %arg6: memref<16x32xf32, #tpu.memory_space<vmem>>) attributes {dimension_semantics = [#tpu.dimension_semantics<parallel>, #tpu.dimension_semantics<parallel>, #tpu.dimension_semantics<arbitrary>], iteration_bounds = array<i64: 1, 1, 1>, scalar_prefetch = 0 : i64, scratch_operands = 1 : i64, tpu.core_type = #tpu.core_type<tc>, window_params = [{transform_indices = @transform_0, window_bounds = array<i64: 16, 32>}, {transform_indices = @transform_1, window_bounds = array<i64: 32, 32>}, {transform_indices = @transform_2, window_bounds = array<i64: 16, 32>}]} {
    %c0_i32 = arith.constant 0 : i32
    %0 = arith.cmpi eq, %arg2, %c0_i32 : i32
    %1 = arith.extui %0 : i1 to i32
    %c0_i32_0 = arith.constant 0 : i32
    %2 = arith.cmpi ne, %1, %c0_i32_0 : i32
    scf.if %2 {
      %cst_10 = arith.constant 0.000000e+00 : f32
      %13 = vector.broadcast %cst_10 : f32 to vector<16x32xf32>
      %c0_11 = arith.constant 0 : index
      %c0_12 = arith.constant 0 : index
      %14 = vector.load %arg6[%c0_11, %c0_12] : memref<16x32xf32, #tpu.memory_space<vmem>>, vector<16x32xf32>
      tpu.vector_store %arg6[%c0_11, %c0_12], %13 {strides = array<i32>} : memref<16x32xf32, #tpu.memory_space<vmem>>, vector<16x32xf32>,
    } else {
    }
    %c0 = arith.constant 0 : index
    %c0_1 = arith.constant 0 : index
    %3 = vector.load %arg6[%c0, %c0_1] : memref<16x32xf32, #tpu.memory_space<vmem>>, vector<16x32xf32>
    %c0_2 = arith.constant 0 : index
    %c0_3 = arith.constant 0 : index
    %4 = vector.load %arg3[%c0_2, %c0_3] : memref<16x32xf32, #tpu.memory_space<vmem>>, vector<16x32xf32>
    %5 = arith.truncf %4 : vector<16x32xf32> to vector<16x32xbf16>
    %c0_4 = arith.constant 0 : index
    %c0_5 = arith.constant 0 : index
    %6 = vector.load %arg4[%c0_4, %c0_5] : memref<32x32xbf16, #tpu.memory_space<vmem>>, vector<32x32xbf16>
    %cst = arith.constant dense<0.000000e+00> : vector<16x32xf32>
    %7 = tpu.matmul %5, %6, %cst {dimension_numbers = #tpu.dot_dimension_numbers<[1], [0], [0], [1], [0, 0, 1, 1], [], []>} : vector<16x32xbf16>, vector<32x32xbf16>, vector<16x32xf32> -> vector<16x32xf32>
    %8 = arith.addf %3, %7 : vector<16x32xf32>
    %c0_6 = arith.constant 0 : index
    %c0_7 = arith.constant 0 : index
    %9 = vector.load %arg6[%c0_6, %c0_7] : memref<16x32xf32, #tpu.memory_space<vmem>>, vector<16x32xf32>
    tpu.vector_store %arg6[%c0_6, %c0_7], %8 {strides = array<i32>} : memref<16x32xf32, #tpu.memory_space<vmem>>, vector<16x32xf32>,
    %c0_i32_8 = arith.constant 0 : i32
    %10 = arith.cmpi eq, %arg2, %c0_i32_8 : i32
    %11 = arith.extui %10 : i1 to i32
    %c0_i32_9 = arith.constant 0 : i32
    %12 = arith.cmpi ne, %11, %c0_i32_9 : i32
    scf.if %12 {
      %c0_10 = arith.constant 0 : index
      %c0_11 = arith.constant 0 : index
      %13 = vector.load %arg6[%c0_10, %c0_11] : memref<16x32xf32, #tpu.memory_space<vmem>>, vector<16x32xf32>
      %c0_12 = arith.constant 0 : index
      %c0_13 = arith.constant 0 : index
      %14 = vector.load %arg5[%c0_12, %c0_13] : memref<16x32xf32, #tpu.memory_space<vmem>>, vector<16x32xf32>
      tpu.vector_store %arg5[%c0_12, %c0_13], %13 {strides = array<i32>} : memref<16x32xf32, #tpu.memory_space<vmem>>, vector<16x32xf32>,
    } else {
    }
    return
  }
  func.func @transform_0(%arg0: i32, %arg1: i32, %arg2: i32) -> (i32, i32) {
    %c0_i32 = arith.constant 0 : i32
    return %arg0, %arg2 : i32, i32
  }
  func.func @transform_1(%arg0: i32, %arg1: i32, %arg2: i32) -> (i32, i32) {
    %c0_i32 = arith.constant 0 : i32
    return %arg2, %arg1 : i32, i32
  }
  func.func @transform_2(%arg0: i32, %arg1: i32, %arg2: i32) -> (i32, i32) {
    %c0_i32 = arith.constant 0 : i32
    return %arg0, %arg1 : i32, i32
  }
}

module attributes {stable_mosaic.version = 11 : i64} {
  func.func @_matmul_kernel(%arg0: i32, %arg1: i32, %arg2: i32, %arg3: memref<16x64xbf16, #tpu.memory_space<vmem>>, %arg4: memref<64x32xbf16, #tpu.memory_space<vmem>>, %arg5: memref<16x32xf32, #tpu.memory_space<vmem>>, %arg6: memref<16x32xf32, #tpu.memory_space<vmem>>) attributes {dimension_semantics = [#tpu.dimension_semantics<parallel>, #tpu.dimension_semantics<parallel>, #tpu.dimension_semantics<arbitrary>], iteration_bounds = array<i64: 1, 1, 1>, scalar_prefetch = 0 : i64, scratch_operands = 1 : i64, tpu.core_type = #tpu.core_type<tc>, window_params = [{transform_indices = @transform_0, window_bounds = array<i64: 16, 64>}, {transform_indices = @transform_1, window_bounds = array<i64: 64, 32>}, {transform_indices = @transform_2, window_bounds = array<i64: 16, 32>}]} {
    %c0_i32 = arith.constant 0 : i32
    %0 = arith.cmpi eq, %arg2, %c0_i32 : i32
    %1 = arith.extui %0 : i1 to i32
    %c0_i32_0 = arith.constant 0 : i32
    %2 = arith.cmpi ne, %1, %c0_i32_0 : i32
    scf.if %2 {
      %cst_10 = arith.constant 0.000000e+00 : f32
      %12 = vector.broadcast %cst_10 : f32 to vector<16x32xf32>
      %c0_11 = arith.constant 0 : index
      %c0_12 = arith.constant 0 : index
      %13 = vector.load %arg6[%c0_11, %c0_12] : memref<16x32xf32, #tpu.memory_space<vmem>>, vector<16x32xf32>
      tpu.vector_store %arg6[%c0_11, %c0_12], %12 {strides = array<i32>} : memref<16x32xf32, #tpu.memory_space<vmem>>, vector<16x32xf32>,
    } else {
    }
    %c0 = arith.constant 0 : index
    %c0_1 = arith.constant 0 : index
    %3 = vector.load %arg6[%c0, %c0_1] : memref<16x32xf32, #tpu.memory_space<vmem>>, vector<16x32xf32>
    %c0_2 = arith.constant 0 : index
    %c0_3 = arith.constant 0 : index
    %4 = vector.load %arg3[%c0_2, %c0_3] : memref<16x64xbf16, #tpu.memory_space<vmem>>, vector<16x64xbf16>
    %c0_4 = arith.constant 0 : index
    %c0_5 = arith.constant 0 : index
    %5 = vector.load %arg4[%c0_4, %c0_5] : memref<64x32xbf16, #tpu.memory_space<vmem>>, vector<64x32xbf16>
    %cst = arith.constant dense<0.000000e+00> : vector<16x32xf32>
    %6 = tpu.matmul %4, %5, %cst {dimension_numbers = #tpu.dot_dimension_numbers<[1], [0], [0], [1], [0, 0, 1, 1], [], []>} : vector<16x64xbf16>, vector<64x32xbf16>, vector<16x32xf32> -> vector<16x32xf32>
    %7 = arith.addf %3, %6 : vector<16x32xf32>
    %c0_6 = arith.constant 0 : index
    %c0_7 = arith.constant 0 : index
    %8 = vector.load %arg6[%c0_6, %c0_7] : memref<16x32xf32, #tpu.memory_space<vmem>>, vector<16x32xf32>
    tpu.vector_store %arg6[%c0_6, %c0_7], %7 {strides = array<i32>} : memref<16x32xf32, #tpu.memory_space<vmem>>, vector<16x32xf32>,
    %c0_i32_8 = arith.constant 0 : i32
    %9 = arith.cmpi eq, %arg2, %c0_i32_8 : i32
    %10 = arith.extui %9 : i1 to i32
    %c0_i32_9 = arith.constant 0 : i32
    %11 = arith.cmpi ne, %10, %c0_i32_9 : i32
    scf.if %11 {
      %c0_10 = arith.constant 0 : index
      %c0_11 = arith.constant 0 : index
      %12 = vector.load %arg6[%c0_10, %c0_11] : memref<16x32xf32, #tpu.memory_space<vmem>>, vector<16x32xf32>
      %c0_12 = arith.constant 0 : index
      %c0_13 = arith.constant 0 : index
      %13 = vector.load %arg5[%c0_12, %c0_13] : memref<16x32xf32, #tpu.memory_space<vmem>>, vector<16x32xf32>
      tpu.vector_store %arg5[%c0_12, %c0_13], %12 {strides = array<i32>} : memref<16x32xf32, #tpu.memory_space<vmem>>, vector<16x32xf32>,
    } else {
    }
    return
  }
  func.func @transform_0(%arg0: i32, %arg1: i32, %arg2: i32) -> (i32, i32) {
    %c0_i32 = arith.constant 0 : i32
    return %arg0, %arg2 : i32, i32
  }
  func.func @transform_1(%arg0: i32, %arg1: i32, %arg2: i32) -> (i32, i32) {
    %c0_i32 = arith.constant 0 : i32
    return %arg2, %arg1 : i32, i32
  }
  func.func @transform_2(%arg0: i32, %arg1: i32, %arg2: i32) -> (i32, i32) {
    %c0_i32 = arith.constant 0 : i32
    return %arg0, %arg1 : i32, i32
  }
}

module attributes {stable_mosaic.version = 11 : i64} {
  func.func @_matmul_kernel(%arg0: i32, %arg1: i32, %arg2: i32, %arg3: memref<16x32xf32, #tpu.memory_space<vmem>>, %arg4: memref<32x64xbf16, #tpu.memory_space<vmem>>, %arg5: memref<16x64xf32, #tpu.memory_space<vmem>>, %arg6: memref<16x64xf32, #tpu.memory_space<vmem>>) attributes {dimension_semantics = [#tpu.dimension_semantics<parallel>, #tpu.dimension_semantics<parallel>, #tpu.dimension_semantics<arbitrary>], iteration_bounds = array<i64: 1, 1, 1>, scalar_prefetch = 0 : i64, scratch_operands = 1 : i64, tpu.core_type = #tpu.core_type<tc>, window_params = [{transform_indices = @transform_0, window_bounds = array<i64: 16, 32>}, {transform_indices = @transform_1, window_bounds = array<i64: 32, 64>}, {transform_indices = @transform_2, window_bounds = array<i64: 16, 64>}]} {
    %c0_i32 = arith.constant 0 : i32
    %0 = arith.cmpi eq, %arg2, %c0_i32 : i32
    %1 = arith.extui %0 : i1 to i32
    %c0_i32_0 = arith.constant 0 : i32
    %2 = arith.cmpi ne, %1, %c0_i32_0 : i32
    scf.if %2 {
      %cst_10 = arith.constant 0.000000e+00 : f32
      %13 = vector.broadcast %cst_10 : f32 to vector<16x64xf32>
      %c0_11 = arith.constant 0 : index
      %c0_12 = arith.constant 0 : index
      %14 = vector.load %arg6[%c0_11, %c0_12] : memref<16x64xf32, #tpu.memory_space<vmem>>, vector<16x64xf32>
      tpu.vector_store %arg6[%c0_11, %c0_12], %13 {strides = array<i32>} : memref<16x64xf32, #tpu.memory_space<vmem>>, vector<16x64xf32>,
    } else {
    }
    %c0 = arith.constant 0 : index
    %c0_1 = arith.constant 0 : index
    %3 = vector.load %arg6[%c0, %c0_1] : memref<16x64xf32, #tpu.memory_space<vmem>>, vector<16x64xf32>
    %c0_2 = arith.constant 0 : index
    %c0_3 = arith.constant 0 : index
    %4 = vector.load %arg3[%c0_2, %c0_3] : memref<16x32xf32, #tpu.memory_space<vmem>>, vector<16x32xf32>
    %5 = arith.truncf %4 : vector<16x32xf32> to vector<16x32xbf16>
    %c0_4 = arith.constant 0 : index
    %c0_5 = arith.constant 0 : index
    %6 = vector.load %arg4[%c0_4, %c0_5] : memref<32x64xbf16, #tpu.memory_space<vmem>>, vector<32x64xbf16>
    %cst = arith.constant dense<0.000000e+00> : vector<16x64xf32>
    %7 = tpu.matmul %5, %6, %cst {dimension_numbers = #tpu.dot_dimension_numbers<[1], [0], [0], [1], [0, 0, 1, 1], [], []>} : vector<16x32xbf16>, vector<32x64xbf16>, vector<16x64xf32> -> vector<16x64xf32>
    %8 = arith.addf %3, %7 : vector<16x64xf32>
    %c0_6 = arith.constant 0 : index
    %c0_7 = arith.constant 0 : index
    %9 = vector.load %arg6[%c0_6, %c0_7] : memref<16x64xf32, #tpu.memory_space<vmem>>, vector<16x64xf32>
    tpu.vector_store %arg6[%c0_6, %c0_7], %8 {strides = array<i32>} : memref<16x64xf32, #tpu.memory_space<vmem>>, vector<16x64xf32>,
    %c0_i32_8 = arith.constant 0 : i32
    %10 = arith.cmpi eq, %arg2, %c0_i32_8 : i32
    %11 = arith.extui %10 : i1 to i32
    %c0_i32_9 = arith.constant 0 : i32
    %12 = arith.cmpi ne, %11, %c0_i32_9 : i32
    scf.if %12 {
      %c0_10 = arith.constant 0 : index
      %c0_11 = arith.constant 0 : index
      %13 = vector.load %arg6[%c0_10, %c0_11] : memref<16x64xf32, #tpu.memory_space<vmem>>, vector<16x64xf32>
      %c0_12 = arith.constant 0 : index
      %c0_13 = arith.constant 0 : index
      %14 = vector.load %arg5[%c0_12, %c0_13] : memref<16x64xf32, #tpu.memory_space<vmem>>, vector<16x64xf32>
      tpu.vector_store %arg5[%c0_12, %c0_13], %13 {strides = array<i32>} : memref<16x64xf32, #tpu.memory_space<vmem>>, vector<16x64xf32>,
    } else {
    }
    return
  }
  func.func @transform_0(%arg0: i32, %arg1: i32, %arg2: i32) -> (i32, i32) {
    %c0_i32 = arith.constant 0 : i32
    return %arg0, %arg2 : i32, i32
  }
  func.func @transform_1(%arg0: i32, %arg1: i32, %arg2: i32) -> (i32, i32) {
    %c0_i32 = arith.constant 0 : i32
    return %arg2, %arg1 : i32, i32
  }
  func.func @transform_2(%arg0: i32, %arg1: i32, %arg2: i32) -> (i32, i32) {
    %c0_i32 = arith.constant 0 : i32
    return %arg0, %arg1 : i32, i32
  }
}

</mosaic_0001>

<bundles_post_ra>
// kernel: _lambda_.16
= control target key start
LH: loop header
LB: loop body
LE: loop exit
PB: predicated region body
PF: predicated region fallthrough
CT: control target
= control target key end

     0   :  { %vm15_vm0 = vcmask 261120   ;;  %s85_s0 = inlined_call_operand.vmem [shape: f32[16,32], index: 0, kind: input, shape index: {}]   ;;  %s86_s1 = inlined_call_operand.vmem [shape: f32[1,32], index: 1, kind: input, shape index: {}]   ;;  %s87_s2 = inlined_call_operand.vmem [shape: f32[16,32], index: 2, kind: output, shape index: {}]  }
   0x1   :  { %v11_v0 = vld [vmem:[%s85_s0] sm:$0xff]  ;;  %v12_v1 = vld [vmem:[%s85_s0 + $0x8] sm:$0xff] }
   0x2   :  { %v13_v2 = vmul.f32 %v11_v0, %v11_v0  ;;  %v14_v3 = vmul.f32 %v12_v1, %v12_v1  ;;  %v46_v13 = vld [vmem:[%s86_s1] ss:$0 sm:$0xff] }
   0x4   :  { %v16_v4 = vsel %vm15_vm0, %v13_v2, 0.0  ;;  %v19_v5 = vsel %vm15_vm0, %v14_v3, 0.0 }
   0x5   :  { %17 = vadd.xlane.f32.xlu0 %v16_v4 }
   0x9   :  { %20 = vadd.xlane.f32.xlu0 %v19_v5 }
  0x8e   :  { %v18_v6 = vpop.xlane.xlu0 %17 }
  0x8f   :  { %v23_v7 = vmul.f32 0.03125, %v18_v6 }
  0x91   :  { %v25_v8 = vadd.f32 1e-05, %v23_v7 }
  0x92   :  { %v21_v9 = vpop.xlane.xlu0 %20 }
  0x93   :  { %47 = vrsqrt.f32 %v25_v8  ;;  %v24_v10 = vmul.f32 0.03125, %v21_v9 }
  0x95   :  { %v26_v11 = vadd.f32 1e-05, %v24_v10 }
  0x97   :  { %49 = vrsqrt.f32 %v26_v11 }
  0xa0   :  { %v48_v12 = vpop.eup %47 }
  0xa1   :  { %v29_v14 = vmul.f32 %v48_v12, %v11_v0 }
  0xa3   :  { %v38_v15 = vmul.f32 %v46_v13, %v29_v14 }
  0xa4   :  { %v50_v16 = vpop.eup %49 }
  0xa5   :  { %40 = vst.msk [vmem:[%s87_s2] sm:$0xff] %vm15_vm0, %v38_v15  ;;  %v30_v17 = vmul.f32 %v50_v16, %v12_v1 }
  0xa7   :  { %v39_v18 = vmul.f32 %v46_v13, %v30_v17 }
  0xa9   :  { %41 = vst.msk [vmem:[%s87_s2 + $0x8] sm:$0xff] %vm15_vm0, %v39_v18 }

// kernel: _lambda_.17
= control target key start
LH: loop header
LB: loop body
LE: loop exit
PB: predicated region body
PF: predicated region fallthrough
CT: control target
= control target key end

     0   :  { %vm16_vm0 = vcmask 785408   ;;  %v119_v0 = vmov 0.0   ;;  %vm120_vm1 = vmmov 0   ;;  %vm40_vm2 = vcmask 261120   ;;  %s160_s1 = inlined_call_operand.vmem [shape: bf16[32,96], index: 1, kind: input, shape index: {}]   ;;  %s161_s0 = inlined_call_operand.vmem [shape: f32[16,32], index: 0, kind: input, shape index: {}]   ;;  %s162_s2 = inlined_call_operand.vmem [shape: f32[16,96], index: 2, kind: output, shape index: {}]  }
   0x1   :  { %107 = vmatprep.subr.bf16.mxu0 %v119_v0  ;;  %v117_v1 = vld [vmem:[%s160_s1 + $0x8] sm:$0xff]   ;;  %111 = vmatprep.mubr.msk.bf16.mxu0 %vm120_vm1, %v119_v0  ;;  %17 = vst.msk [vmem:[#allocation2] sm:$0xff] %vm16_vm0, %v119_v0  ;;  %18 = vst.msk [vmem:[#allocation2 + $0x8] sm:$0xff] %vm16_vm0, %v119_v0  ;;  %v118_v2 = vld [vmem:[%s160_s1] sm:$0xff]  }
   0x2   :  { %108 = vmatpush3.bf16.msra.mxu0 %v117_v1  ;;  %v21_v3 = vld [vmem:[%s161_s0] sm:$0xff]  ;;  %v22_v4 = vld [vmem:[%s161_s0 + $0x8] sm:$0xff] }
   0x3   :  { %109 = vmatprep.subr.bf16.mxu0 %v119_v0  ;;  %v23_v5 = vpack.c.bf16 %v22_v4, %v21_v3 }
   0x6   :  { %110 = vmatpush3.bf16.msra.mxu0 %v118_v2 }
   0x8   :  { %v19_v6 = vld [vmem:[#allocation2] sm:$0xff]  ;;  %v20_v10 = vld [vmem:[#allocation2 + $0x8] sm:$0xff] }
   0x9   :  { %112 = vmatmul.mubr.msk.bf16.vlgmr.msra.gmra.mxu0 %vm40_vm2, %v23_v5 }
  0xc9   :  { %v78_v7 = vpop.f32.mrf.mxu0 }
  0xca   :  { %v85_v8 = vadd.f32 %v78_v7, %v19_v6 }
  0xcb   :  { %v113_v9 = vpop.f32.mrf.mxu0 }
  0xcc   :  { %88 = vst.msk [vmem:[#allocation2] sm:$0xff] %vm16_vm0, %v85_v8 }
  0xcd   :  { %v81_v11 = vpop.f32.mrf.mxu0 }
  0xce   :  { %v86_v12 = vadd.f32 %v81_v11, %v20_v10 }
  0xcf   :  { %v114_v13 = vpop.f32.mrf.mxu0 }
  0xd0   :  { %89 = vst.msk [vmem:[#allocation2 + $0x8] sm:$0xff] %vm16_vm0, %v86_v12 }
  0xd3   :  { %v93_v14 = vld [vmem:[#allocation2] sm:$0xff] }
  0xd4   :  { %95 = vst.msk [vmem:[%s162_s2] sm:$0xff] %vm16_vm0, %v93_v14 }
  0xd7   :  { %v94_v15 = vld [vmem:[#allocation2 + $0x8] sm:$0xff] }
  0xd8   :  { %96 = vst.msk [vmem:[%s162_s2 + $0x8] sm:$0xff] %vm16_vm0, %v94_v15 }

// kernel: _lambda_.18
= control target key start
LH: loop header
LB: loop body
LE: loop exit
PB: predicated region body
PF: predicated region fallthrough
CT: control target
= control target key end

     0   :  { %s657_s12 = smov 0   ;;  %s659_s13 = smov 0   ;;  %s714_s0 = inlined_call_operand.vmem [shape: f32[8,8,8], index: 0, kind: input, shape index: {}]   ;;  %s715_s1 = inlined_call_operand.vmem [shape: f32[8,8,8], index: 1, kind: input, shape index: {}]   ;;  %s716_s2 = inlined_call_operand.vmem [shape: f32[8,8,8], index: 2, kind: input, shape index: {}]   ;;  %s717_s3 = inlined_call_operand.vmem [shape: f32[8,8,8], index: 3, kind: output, shape index: {}]  }
   0x1   :  { %s661_s14 = smov 0  }
   0x2 LB: > { %s32_s15 = sadd.s32 1, %s627_s13  ;;  %p548_p0 = scmp.ge.s32.totalorder %s631_s14, 1  ;;  %s631_s14 = sphi %s661_s14, %s13_s14   ;;  %s627_s13 = sphi %s659_s13, %s719_s13   ;;  %s623_s12 = sphi %s657_s12, %s718_s12  }
   0x3   : > { %p34_p1 = scmp.ge.s32.totalorder %s32_s15, 8  ;;  %p190_p2 = scmp.lt.s32.totalorder %s631_s14, 9 }
   0x5   : > { %s721_s15 = smov (%p34_p1, %s32_s15), 0  ;;  %p191_p3 = pnand %p548_p0, %p190_p2 }
   0x6   : > { %p232_p4 = scmp.lt.s32.totalorder (!%p191_p3), %s623_s12, 7 }
   0x7   : > { %194 = sbr.rel (%p191_p3) target bundleno = 793 (0x319), region = 32 }
   0xc   : > { %vm268_vm0 = vcmask 64512   ;;  %v633_v0 = vmov 0.0   ;;  %vm634_vm1 = vmmov 0   ;;  %s723_s12 = smov (!%p232_p4, %s623_s12), 7  ;;  %vm265_vm2 = vcmask 7168  }
   0xd   : > { %561 = vmatprep.subr.bf16.mxu0 %v633_v0  ;;  %269 = vst.msk [vmem:[#allocation4] sm:$0xff] %vm268_vm0, %v633_v0  ;;  %563 = vmatprep.mubr.msk.bf16.mxu0 %vm634_vm1, %v633_v0  ;;  %s676_s16 = sshll.u32 %s723_s12, 3  ;;  %v635_v7 = vmov -1e+30   ;;  %v329_v8 = vlaneseq  ;;  %v636_v17 = vmov 0   ;;  %vm376_vm4 = vcmask 1043456  }
   0xe   : > { %567 = vmatprep.subr.bf16.mxu1 %v633_v0  ;;  %569 = vmatprep.mubr.msk.bf16.mxu1 %vm634_vm1, %v633_v0  ;;  %s245_s19 = scalar_lea.vmem %s715_s1, %s676_s16  ;;  %s238_s22 = scalar_lea.vmem %s714_s0, %s676_s16  ;;  %266 = vst.msk [vmem:[#allocation2] sm:$0xff] %vm265_vm2, %v635_v7  ;;  %267 = vst.msk [vmem:[#allocation3] sm:$0xff] %vm265_vm2, %v633_v0 }
   0xf   : > { %v280_v1 = vld [vmem:[%s245_s19] sm:$0xff]  ;;  %v330_v9 = vshrl.u32 %v329_v8, 7  ;;  %v334_v10 = vand.u32 127, %v329_v8  ;;  %601 = vset.pattern.permute.xlu0 %v636_v17  ;;  %602 = vset.pattern.permute.xlu1 %v636_v17  ;;  %s252_s25 = scalar_lea.vmem %s716_s2, %s676_s16  ;;  %s259_s28 = scalar_lea.vmem %s717_s3, %s676_s16 }
  0x10   : > { %v277_v2 = vld [vmem:[%s238_s22] sm:$0xff]  ;;  %v281_v3 = vpack.c.bf16 %v280_v1, %v280_v1 }
  0x11   : > { %v278_v5 = vmul.f32 0.35355338, %v277_v2  ;;  %vm337_vm3 = vcmp.le.s32.totalorder %v334_v10, %v330_v9  ;;  %v371_v22 = vld [vmem:[%s252_s25] sm:$0xff] }
  0x12   : > { %v287_v4 = vsel %vm268_vm0, %v281_v3, 0  ;;  %v372_v23 = vpack.c.bf16 %v371_v22, %v371_v22 }
  0x13   : > { %562 = vmatpush3.bf16.xpose.msra.mxu0 %v287_v4  ;;  %v279_v6 = vpack.c.bf16 %v278_v5, %v278_v5 }
  0x14   : > { %v378_v24 = vsel %vm376_vm4, %v372_v23, 0  ;;  %v363_v39 = vld [vmem:[#allocation4] sm:$0xff] }
  0x15   : > { %v339_v18 = vld [vmem:[#allocation2] sm:$0xff]  ;;  %568 = vmatpush3.bf16.msra.mxu1 %v378_v24  ;;  %v355_v33 = vld [vmem:[#allocation3] sm:$0xff] }
  0x1a   : > { %564 = vmatmul.mubr.msk.bf16.vlgmr.msra.gmra.mxu0 %vm268_vm0, %v279_v6 }
  0xda   : > { %v323_v11 = vpop.f32.mrf.mxu0 }
  0xdb   : > { %v338_v12 = vsel %vm337_vm3, %v323_v11, -1e+30 }
  0xdc   : > { %v565_v13 = vpop.f32.mrf.mxu0  ;;  %v340_v14 = vsel %vm268_vm0, %v338_v12, -inf }
  0xdd   : > { %341 = vmax.xlane.f32.xlu0 %v340_v14 }
  0xde   : > { %v326_v15 = vpop.f32.mrf.mxu0 }
  0xe0   : > { %v566_v16 = vpop.f32.mrf.mxu0 }
 0x166   : > { %v342_v19 = vpop.xlane.xlu0 %341 }
 0x167   : > { %v343_v20 = vmax.f32 %v339_v18, %v342_v19 }
 0x169   : > { %v344_v21 = vsub.f32 %v339_v18, %v343_v20  ;;  %422 = vst.msk [vmem:[#allocation2] sm:$0xff] %vm265_vm2, %v343_v20  ;;  %349 = vperm.xlu0 %601, %v343_v20  }
 0x16b   : > { %v345_v29 = vmul.f32 1.442695, %v344_v21 }
 0x1e4   : > { %v350_v25 = vpop.permute.xlu0 %349 }
 0x1e5   : > { %v352_v26 = vsub.f32 %v338_v12, %v350_v25 }
 0x1e7   : > { %v353_v27 = vmul.f32 1.442695, %v352_v26 }
 0x1e9   : > { %603 = vpow2.f32 %v353_v27 }
 0x1ea   : > { %605 = vpow2.f32 %v345_v29 }
 0x1f6   : > { %v604_v28 = vpop.eup %603 }
 0x1f7   : > { %v357_v30 = vsel %vm268_vm0, %v604_v28, 0.0  ;;  %v370_v31 = vpack.c.bf16 %v604_v28, %v604_v28  ;;  %v606_v32 = vpop.eup %605 }
 0x1f8   : > { %358 = vadd.xlane.f32.xlu1 %v357_v30  ;;  %v356_v34 = vmul.f32 %v606_v32, %v355_v33 }
 0x1f9   : > { %570 = vmatmul.mubr.msk.bf16.vlgmr.msra.gmra.mxu1 %vm268_vm0, %v370_v31 }
 0x209   : > { %366 = vperm.xlu1 %602, %v606_v32  }
 0x281   : > { %v359_v35 = vpop.xlane.xlu1 %358 }
 0x282   : > { %v360_v36 = vadd.f32 %v359_v35, %v356_v34 }
 0x284   : > { %362 = vst.msk [vmem:[#allocation3] sm:$0xff] %vm265_vm2, %v360_v36 }
 0x285   : > { %v367_v40 = vpop.permute.xlu1 %366 }
 0x286   : > { %v369_v41 = vmul.f32 %v367_v40, %v363_v39 }
 0x28b   : > { %v426_v37 = vld [vmem:[#allocation3] sm:$0xff] }
 0x28c   : > { %607 = vrcp.f32 %v426_v37 }
 0x299   : > { %v608_v38 = vpop.eup %607 }
 0x29a   : > { %431 = vperm.xlu1 %602, %v608_v38  }
 0x2b9   : > { %v414_v42 = vpop.f32.mrf.mxu1 }
 0x2ba   : > { %v420_v43 = vadd.f32 %v414_v42, %v369_v41 }
 0x2bb   : > { %v571_v44 = vpop.f32.mrf.mxu1 }
 0x2bc   : > { %421 = vst.msk [vmem:[#allocation4] sm:$0xff] %vm268_vm0, %v420_v43 }
 0x2bd   : > { %v417_v45 = vpop.f32.mrf.mxu1 }
 0x2bf   : > { %v572_v46 = vpop.f32.mrf.mxu1 }
 0x2c3   : > { %v428_v47 = vld [vmem:[#allocation4] sm:$0xff] }
 0x315   : > { %v432_v48 = vpop.permute.xlu1 %431 }
 0x316   : > { %v434_v49 = vmul.f32 %v432_v48, %v428_v47 }
 0x318   : > { %436 = vst.msk [vmem:[%s259_s28] sm:$0xff] %vm268_vm0, %v434_v49 }
 0x319 PF: > { %s13_s14 = sadd.s32 1, %s631_s14   ;;  %s718_s12 = smov %s627_s13 }
 0x31a   : > { %p10_p5 = scmp.ge.s32.totalorder %s13_s14, 10   ;;  %s719_s13 = smov %s721_s15 }
 0x31c   :  { %12 = sbr.rel (!%p10_p5) target bundleno = 2 (0x2), region = 80 }

// kernel: _lambda_.19
= control target key start
LH: loop header
LB: loop body
LE: loop exit
PB: predicated region body
PF: predicated region fallthrough
CT: control target
= control target key end

     0   :  { %vm16_vm0 = vcmask 261120   ;;  %v118_v0 = vmov 0.0   ;;  %vm119_vm1 = vmmov 0   ;;  %s160_s1 = inlined_call_operand.vmem [shape: bf16[32,32], index: 1, kind: input, shape index: {}]   ;;  %s161_s0 = inlined_call_operand.vmem [shape: f32[16,32], index: 0, kind: input, shape index: {}]   ;;  %s162_s2 = inlined_call_operand.vmem [shape: f32[16,32], index: 2, kind: output, shape index: {}]  }
   0x1   :  { %106 = vmatprep.subr.bf16.mxu0 %v118_v0  ;;  %v116_v1 = vld [vmem:[%s160_s1 + $0x8] sm:$0xff]   ;;  %110 = vmatprep.mubr.msk.bf16.mxu0 %vm119_vm1, %v118_v0  ;;  %17 = vst.msk [vmem:[#allocation2] sm:$0xff] %vm16_vm0, %v118_v0  ;;  %18 = vst.msk [vmem:[#allocation2 + $0x8] sm:$0xff] %vm16_vm0, %v118_v0  ;;  %v117_v2 = vld [vmem:[%s160_s1] sm:$0xff]  }
   0x2   :  { %107 = vmatpush3.bf16.msra.mxu0 %v116_v1  ;;  %v21_v3 = vld [vmem:[%s161_s0] sm:$0xff]  ;;  %v22_v4 = vld [vmem:[%s161_s0 + $0x8] sm:$0xff] }
   0x3   :  { %108 = vmatprep.subr.bf16.mxu0 %v118_v0  ;;  %v23_v5 = vpack.c.bf16 %v22_v4, %v21_v3 }
   0x6   :  { %109 = vmatpush3.bf16.msra.mxu0 %v117_v2 }
   0x8   :  { %v19_v6 = vld [vmem:[#allocation2] sm:$0xff]  ;;  %v20_v10 = vld [vmem:[#allocation2 + $0x8] sm:$0xff] }
   0x9   :  { %111 = vmatmul.mubr.msk.bf16.vlgmr.msra.gmra.mxu0 %vm16_vm0, %v23_v5 }
  0xc9   :  { %v78_v7 = vpop.f32.mrf.mxu0 }
  0xca   :  { %v85_v8 = vadd.f32 %v78_v7, %v19_v6 }
  0xcb   :  { %v112_v9 = vpop.f32.mrf.mxu0 }
  0xcc   :  { %87 = vst.msk [vmem:[#allocation2] sm:$0xff] %vm16_vm0, %v85_v8 }
  0xcd   :  { %v81_v11 = vpop.f32.mrf.mxu0 }
  0xce   :  { %v86_v12 = vadd.f32 %v81_v11, %v20_v10 }
  0xcf   :  { %v113_v13 = vpop.f32.mrf.mxu0 }
  0xd0   :  { %88 = vst.msk [vmem:[#allocation2 + $0x8] sm:$0xff] %vm16_vm0, %v86_v12 }
  0xd3   :  { %v92_v14 = vld [vmem:[#allocation2] sm:$0xff] }
  0xd4   :  { %94 = vst.msk [vmem:[%s162_s2] sm:$0xff] %vm16_vm0, %v92_v14 }
  0xd7   :  { %v93_v15 = vld [vmem:[#allocation2 + $0x8] sm:$0xff] }
  0xd8   :  { %95 = vst.msk [vmem:[%s162_s2 + $0x8] sm:$0xff] %vm16_vm0, %v93_v15 }

// kernel: _lambda_.22
= control target key start
LH: loop header
LB: loop body
LE: loop exit
PB: predicated region body
PF: predicated region fallthrough
CT: control target
= control target key end

     0   :  { %vm16_vm0 = vcmask 261120   ;;  %v151_v0 = vmov 0.0   ;;  %vm152_vm1 = vmmov 0   ;;  %vm60_vm2 = vcmask 523264   ;;  %s195_s1 = inlined_call_operand.vmem [shape: bf16[64,32], index: 1, kind: input, shape index: {}]   ;;  %s196_s0 = inlined_call_operand.vmem [shape: bf16[16,64], index: 0, kind: input, shape index: {}]   ;;  %s197_s2 = inlined_call_operand.vmem [shape: f32[16,32], index: 2, kind: output, shape index: {}]  }
   0x1   :  { %132 = vmatprep.subr.bf16.mxu0 %v151_v0  ;;  %v146_v1 = vld [vmem:[%s195_s1 + $0x18] sm:$0xff]   ;;  %140 = vmatprep.mubr.msk.bf16.mxu0 %vm152_vm1, %v151_v0  ;;  %17 = vst.msk [vmem:[#allocation2] sm:$0xff] %vm16_vm0, %v151_v0  ;;  %18 = vst.msk [vmem:[#allocation2 + $0x8] sm:$0xff] %vm16_vm0, %v151_v0  ;;  %v147_v2 = vld [vmem:[%s195_s1 + $0x10] sm:$0xff]  }
   0x2   :  { %133 = vmatpush3.bf16.msra.mxu0 %v146_v1  ;;  %v148_v3 = vld [vmem:[%s195_s1 + $0x8] sm:$0xff]   ;;  %v149_v4 = vld [vmem:[%s195_s1] sm:$0xff]  }
   0x3   :  { %134 = vmatprep.subr.bf16.mxu0 %v151_v0  ;;  %v150_v5 = vld [vmem:[%s196_s0] sm:$0xff]  }
   0x6   :  { %135 = vmatpush3.bf16.msra.mxu0 %v147_v2 }
   0x7   :  { %136 = vmatprep.subr.bf16.mxu0 %v151_v0 }
   0x8   :  { %v19_v6 = vld [vmem:[#allocation2] sm:$0xff]  ;;  %v20_v10 = vld [vmem:[#allocation2 + $0x8] sm:$0xff] }
   0xa   :  { %137 = vmatpush3.bf16.msra.mxu0 %v148_v3 }
   0xb   :  { %138 = vmatprep.subr.bf16.mxu0 %v151_v0 }
   0xe   :  { %139 = vmatpush3.bf16.msra.mxu0 %v149_v4 }
  0x11   :  { %141 = vmatmul.mubr.msk.bf16.vlgmr.msra.gmra.mxu0 %vm60_vm2, %v150_v5 }
  0xd1   :  { %v98_v7 = vpop.f32.mrf.mxu0 }
  0xd2   :  { %v105_v8 = vadd.f32 %v98_v7, %v19_v6 }
  0xd3   :  { %v142_v9 = vpop.f32.mrf.mxu0 }
  0xd4   :  { %108 = vst.msk [vmem:[#allocation2] sm:$0xff] %vm16_vm0, %v105_v8 }
  0xd5   :  { %v101_v11 = vpop.f32.mrf.mxu0 }
  0xd6   :  { %v106_v12 = vadd.f32 %v101_v11, %v20_v10 }
  0xd7   :  { %v143_v13 = vpop.f32.mrf.mxu0 }
  0xd8   :  { %109 = vst.msk [vmem:[#allocation2 + $0x8] sm:$0xff] %vm16_vm0, %v106_v12 }
  0xdb   :  { %v113_v14 = vld [vmem:[#allocation2] sm:$0xff] }
  0xdc   :  { %115 = vst.msk [vmem:[%s197_s2] sm:$0xff] %vm16_vm0, %v113_v14 }
  0xdf   :  { %v114_v15 = vld [vmem:[#allocation2 + $0x8] sm:$0xff] }
  0xe0   :  { %116 = vst.msk [vmem:[%s197_s2 + $0x8] sm:$0xff] %vm16_vm0, %v114_v15 }

// kernel: _lambda_.21
= control target key start
LH: loop header
LB: loop body
LE: loop exit
PB: predicated region body
PF: predicated region fallthrough
CT: control target
= control target key end

     0   :  { %vm19_vm0 = vcmask 523264   ;;  %v244_v0 = vmov 0.0   ;;  %vm245_vm1 = vmmov 0   ;;  %vm45_vm2 = vcmask 261120   ;;  %s298_s1 = inlined_call_operand.vmem [shape: bf16[32,64], index: 1, kind: input, shape index: {}]   ;;  %s299_s0 = inlined_call_operand.vmem [shape: f32[16,32], index: 0, kind: input, shape index: {}]   ;;  %s300_s2 = inlined_call_operand.vmem [shape: bf16[32,64], index: 2, kind: input, shape index: {}]   ;;  %s301_s3 = inlined_call_operand.vmem [shape: bf16[16,64], index: 3, kind: output, shape index: {}]  }
   0x1   :  { %214 = vmatprep.subr.bf16.mxu0 %v244_v0  ;;  %v232_v1 = vld [vmem:[%s298_s1 + $0x8] sm:$0xff]   ;;  %218 = vmatprep.mubr.msk.bf16.mxu0 %vm245_vm1, %v244_v0  ;;  %20 = vst.msk [vmem:[#allocation2] sm:$0xff] %vm19_vm0, %v244_v0  ;;  %21 = vst.msk [vmem:[#allocation2 + $0x8] sm:$0xff] %vm19_vm0, %v244_v0  ;;  %v233_v2 = vld [vmem:[%s298_s1] sm:$0xff]   ;;  %vm189_vm3 = vcmask 519168  }
   0x2   :  { %22 = vst.msk [vmem:[#allocation3] sm:$0xff] %vm19_vm0, %v244_v0  ;;  %23 = vst.msk [vmem:[#allocation3 + $0x8] sm:$0xff] %vm19_vm0, %v244_v0  ;;  %222 = vmatprep.subr.bf16.mxu1 %v244_v0  ;;  %226 = vmatprep.mubr.msk.bf16.mxu1 %vm245_vm1, %v244_v0  ;;  %v24_v3 = vld [vmem:[%s299_s0] sm:$0xff]  ;;  %v25_v4 = vld [vmem:[%s299_s0 + $0x8] sm:$0xff] }
   0x3   :  { %215 = vmatpush3.bf16.msra.mxu0 %v232_v1  ;;  %v234_v5 = vld [vmem:[%s300_s2 + $0x8] sm:$0xff]   ;;  %v26_v6 = vpack.c.bf16 %v25_v4, %v24_v3  ;;  %v235_v7 = vld [vmem:[%s300_s2] sm:$0xff]  }
   0x4   :  { %216 = vmatprep.subr.bf16.mxu0 %v244_v0  ;;  %223 = vmatpush3.bf16.msra.mxu1 %v234_v5 }
   0x5   :  { %224 = vmatprep.subr.bf16.mxu1 %v244_v0 }
   0x7   :  { %217 = vmatpush3.bf16.msra.mxu0 %v233_v2 }
   0x8   :  { %225 = vmatpush3.bf16.msra.mxu1 %v235_v7  ;;  %v27_v8 = vld [vmem:[#allocation2] sm:$0xff]  ;;  %v28_v13 = vld [vmem:[#allocation2 + $0x8] sm:$0xff] }
   0x9   :  { %v95_v11 = vld [vmem:[#allocation3] sm:$0xff]  ;;  %v96_v19 = vld [vmem:[#allocation3 + $0x8] sm:$0xff] }
   0xa   :  { %219 = vmatmul.mubr.msk.bf16.vlgmr.msra.gmra.mxu0 %vm45_vm2, %v26_v6 }
   0xb   :  { %227 = vmatmul.mubr.msk.bf16.vlgmr.msra.gmra.mxu1 %vm45_vm2, %v26_v6 }
  0xca   :  { %v83_v9 = vpop.f32.mrf.mxu0 }
  0xcb   :  { %v90_v10 = vadd.f32 %v83_v9, %v27_v8  ;;  %v147_v14 = vpop.f32.mrf.mxu1 }
  0xcc   :  { %v220_v12 = vpop.f32.mrf.mxu0  ;;  %v154_v16 = vadd.f32 %v147_v14, %v95_v11 }
  0xcd   :  { %93 = vst.msk [vmem:[#allocation2] sm:$0xff] %vm19_vm0, %v90_v10  ;;  %v228_v18 = vpop.f32.mrf.mxu1 }
  0xce   :  { %v86_v15 = vpop.f32.mrf.mxu0  ;;  %156 = vst.msk [vmem:[#allocation3] sm:$0xff] %vm19_vm0, %v154_v16 }
  0xcf   :  { %v91_v17 = vadd.f32 %v86_v15, %v28_v13  ;;  %v150_v21 = vpop.f32.mrf.mxu1 }
  0xd0   :  { %v221_v20 = vpop.f32.mrf.mxu0  ;;  %v155_v22 = vadd.f32 %v150_v21, %v96_v19 }
  0xd1   :  { %94 = vst.msk [vmem:[#allocation2 + $0x8] sm:$0xff] %vm19_vm0, %v91_v17  ;;  %v229_v23 = vpop.f32.mrf.mxu1 }
  0xd2   :  { %157 = vst.msk [vmem:[#allocation3 + $0x8] sm:$0xff] %vm19_vm0, %v155_v22 }
  0xd4   :  { %v161_v24 = vld [vmem:[#allocation2] sm:$0xff] }
  0xd5   :  { %v202_v25 = vmul.f32 -1.442695, %v161_v24  ;;  %v177_v33 = vld [vmem:[#allocation3] sm:$0xff] }
  0xd7   :  { %236 = vpow2.f32 %v202_v25 }
  0xd8   :  { %v162_v26 = vld [vmem:[#allocation2 + $0x8] sm:$0xff] }
  0xd9   :  { %v203_v27 = vmul.f32 -1.442695, %v162_v26  ;;  %v178_v39 = vld [vmem:[#allocation3 + $0x8] sm:$0xff] }
  0xdb   :  { %238 = vpow2.f32 %v203_v27 }
  0xe4   :  { %v237_v28 = vpop.eup %236 }
  0xe5   :  { %v169_v29 = vadd.f32 1.0, %v237_v28 }
  0xe7   :  { %240 = vrcp.f32 %v169_v29 }
  0xe8   :  { %v239_v30 = vpop.eup %238 }
  0xe9   :  { %v170_v31 = vadd.f32 1.0, %v239_v30 }
  0xeb   :  { %242 = vrcp.f32 %v170_v31 }
  0xf4   :  { %v241_v32 = vpop.eup %240 }
  0xf5   :  { %v175_v34 = vmul.f32 %v241_v32, %v161_v24 }
  0xf7   :  { %v179_v35 = vmul.f32 %v177_v33, %v175_v34 }
  0xf8   :  { %v243_v36 = vpop.eup %242 }
  0xf9   :  { %v176_v37 = vmul.f32 %v243_v36, %v162_v26  ;;  %v206_v38 = vpack.c.bf16 %v179_v35, %v179_v35 }
  0xfb   :  { %190 = vst.msk [vmem:[%s301_s3] sm:$0xf] %vm189_vm3, %v206_v38  ;;  %v180_v40 = vmul.f32 %v178_v39, %v176_v37 }
  0xfd   :  { %v207_v41 = vpack.c.bf16 %v180_v40, %v180_v40 }
  0xff   :  { %191 = vst.msk [vmem:[%s301_s3 + $0x4] sm:$0xf] %vm189_vm3, %v207_v41 }

// kernel: _lambda_.31
= control target key start
LH: loop header
LB: loop body
LE: loop exit
PB: predicated region body
PF: predicated region fallthrough
CT: control target
= control target key end

     0   :  { %v157_v1 = vmov 0.0   ;;  %vm158_vm0 = vmmov 0   ;;  %vm17_vm1 = vcmask 523264   ;;  %s198_s0 = inlined_call_operand.vmem [shape: f32[16,32], index: 0, kind: input, shape index: {}]   ;;  %s199_s1 = inlined_call_operand.vmem [shape: bf16[32,64], index: 1, kind: input, shape index: {}]   ;;  %s200_s2 = inlined_call_operand.hbm [shape: f32[16,64], index: 2, kind: output, shape index: {}]  }
   0x1   :  { %v133_v0 = vld [vmem:[%s199_s1 + $0x8] sm:$0xff]   ;;  %120 = vmatprep.subr.bf16.mxu0 %v157_v1  ;;  %v134_v2 = vld [vmem:[%s199_s1] sm:$0xff]   ;;  %124 = vmatprep.mubr.msk.bf16.mxu0 %vm158_vm0, %v157_v1 }
   0x2   :  { %121 = vmatpush3.bf16.msra.mxu0 %v133_v0  ;;  %v22_v3 = vld [vmem:[%s198_s0] sm:$0xff]  ;;  %v23_v4 = vld [vmem:[%s198_s0 + $0x8] sm:$0xff] }
   0x3   :  { %7 = vsyncpa [#allocation4], 0  ;;  %122 = vmatprep.subr.bf16.mxu0 %v157_v1  ;;  %18 = vst.msk [vmem:[#allocation2] sm:$0xff] %vm17_vm1, %v157_v1  ;;  %v24_v5 = vpack.c.bf16 %v23_v4, %v22_v3  ;;  %vm41_vm2 = vcmask 261120   ;;  %s159_s0 = smov [#allocation3]  }
   0x4   :  { %19 = vst.msk [vmem:[#allocation2 + $0x8] sm:$0xff] %vm17_vm1, %v157_v1  ;;  %s103_s1 = sshll.u32 %s159_s0, 4  ;;  %s104_s1 = int_to_ptr.vmem [resolvable:$true] %s103_s1 }
   0x5   :  { %s135_s17 = scalar_lea.vmem %s104_s1, 256  ;;  %p140_p1 = scmp.lt.s32.totalorder %s104_s1, %s104_s1 }
   0x6   :  { %123 = vmatpush3.bf16.msra.mxu0 %v134_v2  ;;  %p136_p0 = scmp.ne.s32.totalorder %s104_s1, %s135_s17  ;;  %p141_p2 = scmp.lt.s32.totalorder %s135_s17, %s135_s17 }
   0x8   :  { %p142_p3 = por %p141_p2, %p140_p1 }
   0x9   :  { %125 = vmatmul.mubr.msk.bf16.vlgmr.msra.gmra.mxu0 %vm41_vm2, %v24_v5 }
   0xa   :  { %v20_v6 = vld [vmem:[#allocation2] sm:$0xff]  ;;  %p143_p4 = pnand %p142_p3, %p136_p0 }
   0xb   :  { %v21_v10 = vld [vmem:[#allocation2 + $0x8] sm:$0xff] }
  0xc9   :  { %v79_v7 = vpop.f32.mrf.mxu0 }
  0xca   :  { %v86_v8 = vadd.f32 %v79_v7, %v20_v6 }
  0xcb   :  { %v126_v9 = vpop.f32.mrf.mxu0 }
  0xcc   :  { %89 = vst.msk [vmem:[#allocation2] sm:$0xff] %vm17_vm1, %v86_v8 }
  0xcd   :  { %v82_v11 = vpop.f32.mrf.mxu0 }
  0xce   :  { %v87_v12 = vadd.f32 %v82_v11, %v21_v10 }
  0xcf   :  { %v127_v13 = vpop.f32.mrf.mxu0 }
  0xd0   :  { %90 = vst.msk [vmem:[#allocation2 + $0x8] sm:$0xff] %vm17_vm1, %v87_v12 }
  0xd3   :  { %v94_v14 = vld [vmem:[#allocation2] sm:$0xff] }
  0xd4   :  { %96 = vst.msk [vmem:[#allocation3] sm:$0xff] %vm17_vm1, %v94_v14 }
  0xd7   :  { %v95_v15 = vld [vmem:[#allocation2 + $0x8] sm:$0xff] }
  0xd8   :  { %97 = vst.msk [vmem:[#allocation3 + $0x8] sm:$0xff] %vm17_vm1, %v95_v15 }
  0xd9   :  { %146 = shalt.err (!%p143_p4)
}
  0xda   :  { %s160_s18 = smov 128   ;;  %s161_s19 = smov 8  }
  0xdb   :  { %109 = dma.vmem_to_hbm [thread:$0]  %s104_s1, 256, %s200_s2, [#allocation4], %s160_s18, %s160_s18, %s161_s19  }
  0xdc   :  { %155 = dma.done.wait [#allocation4], 256  }
  0xdd   :  { %156 = vsyncadd [#allocation4], 4294967040 }
  0xde   :  { %113 = vsyncpa [#allocation4], 1 }

</bundles_post_ra>
